<compile_context>
chip_gen: v7x
topology: tpu7x:2x2x1
jax: 0.10.0
libtpu: 0.0.40
codegen_flags: <defaults>
</compile_context>

<pallas_src>
import functools

import jax
import jax.numpy as jnp
from jax.experimental import pallas as pl
from jax.experimental.pallas import tpu as pltpu


# ------------------------------- helpers ------------------------------------

def _round_up(x, m):
    return (x + m - 1) // m * m


def _pad2(a, rows, cols):
    r, c = a.shape
    return jnp.pad(a, ((0, rows - r), (0, cols - c)))


# --------------------------- fused Pallas kernel ----------------------------

def fused_gin_kernel(adj_ref, x_ref, enc_w_ref, enc_b_ref,
                     w1_ref, b1_ref, w2_ref, b2_ref,
                     out_w_ref, out_b_ref,
                     logits_ref, emb_ref, *, n_layers):
    """Whole GINNode forward; adj and activations stay resident in VMEM.

    adj_ref holds A + (1+eps)*I (bf16), so the GIN aggregation is one matmul.
    BatchNorm (eval) is pre-folded into w1/b1, so each layer is
        x = relu( relu( (A_eff @ x) @ w1' + b1' ) @ w2 + b2 )
    and dropout is identity (eval mode).
    """
    adj = adj_ref[...]                                          # bf16 [Np, Np]

    # node_encoder: Linear(x_dim, hidden)
    x = (jnp.dot(x_ref[...], enc_w_ref[...],
                 preferred_element_type=jnp.float32) + enc_b_ref[...])

    for l in range(n_layers):                                   # statically unrolled
        # GINConv aggregation: (1+eps)*x_i + sum_{j in N(i)} x_j == A_eff @ x
        agg = jnp.dot(adj, x.astype(jnp.bfloat16),
                      preferred_element_type=jnp.float32)
        # MLP: Linear -> BatchNorm(eval, folded into w1/b1) -> ReLU -> Linear
        h = (jnp.dot(agg.astype(jnp.bfloat16), w1_ref[l],
                     preferred_element_type=jnp.float32) + b1_ref[l])
        h = jnp.maximum(h, 0.0)
        h = (jnp.dot(h.astype(jnp.bfloat16), w2_ref[l],
                     preferred_element_type=jnp.float32) + b2_ref[l])
        # post-conv ReLU from GINNode.forward; dropout is identity in eval mode.
        x = jnp.maximum(h, 0.0)

    emb_ref[...] = x                                            # IdenticalPool
    # fc_out: Linear(hidden, n_out)
    logits_ref[...] = (jnp.dot(x.astype(jnp.bfloat16), out_w_ref[...],
                               preferred_element_type=jnp.float32)
                       + out_b_ref[...])


# ----------------------------- parameter setup ------------------------------

def init_params(key, x_dim, hidden, n_layers, n_out):
    keys = jax.random.split(key, 4 + 6 * n_layers)
    k = iter(keys)

    def lin(kw, kb, fan_in, fan_out):
        w = jax.random.normal(kw, (fan_in, fan_out), jnp.float32) * 0.1
        b = jax.random.normal(kb, (fan_out,), jnp.float32) * 0.05
        return w, b

    params = {}
    params["enc_w"], params["enc_b"] = lin(next(k), next(k), x_dim, hidden)

    layers = []
    for _ in range(n_layers):
        w1, b1 = lin(next(k), next(k), hidden, hidden)
        w2, b2 = lin(next(k), next(k), hidden, hidden)
        gamma = 1.0 + 0.1 * jax.random.normal(next(k), (hidden,), jnp.float32)
        beta = 0.05 * jax.random.normal(next(k), (hidden,), jnp.float32)
        layers.append({"w1": w1, "b1": b1, "w2": w2, "b2": b2,
                       "gamma": gamma, "beta": beta,
                       "running_mean": jnp.zeros((hidden,), jnp.float32),
                       "running_var": jnp.ones((hidden,), jnp.float32)})
    params["layers"] = layers

    params["out_w"], params["out_b"] = lin(next(k), next(k), hidden, n_out)
    return params


# ------------------------------ forward (glue) -------------------------------

@functools.partial(jax.jit, static_argnames=("n_layers", "eps", "bn_eps"))
def gin_node_forward(params, x, edge_index, batch, n_layers, eps=0.0, bn_eps=1e-5):
    n, x_dim = x.shape
    hidden = params["enc_w"].shape[1]
    n_out = params["out_w"].shape[1]

    # lane/sublane-friendly padded sizes
    n_p = _round_up(n, 16)          # bf16 sublane pack = 16 rows per vreg
    x_p = _round_up(x_dim, 128)
    h_p = _round_up(hidden, 128)
    o_p = _round_up(n_out, 128)     # lane-dense output -> unmasked vst

    # dense adjacency with (1+eps)*I folded in: A[i, j] = #edges j -> i
    src, dst = edge_index[0], edge_index[1]
    adj = jnp.zeros((n_p, n_p), jnp.float32).at[dst, src].add(1.0)
    idx = jnp.arange(n)
    adj = adj.at[idx, idx].add(1.0 + eps)          # only real nodes: padded rows/cols stay zero
    adj = adj.astype(jnp.bfloat16)                 # small integer counts -> exact in bf16

    x_pad = _pad2(x, n_p, x_p).astype(jnp.bfloat16)

    enc_w = _pad2(params["enc_w"], x_p, h_p).astype(jnp.bfloat16)
    enc_b = _pad2(params["enc_b"].reshape(1, -1), 1, h_p)

    # fold BatchNorm eval statistics into w1/b1; pad + stack per-layer weights
    w1s, b1s, w2s, b2s = [], [], [], []
    for lp in params["layers"][:n_layers]:
        scale = lp["gamma"] / jnp.sqrt(lp["running_var"] + bn_eps)
        shift = lp["beta"] - lp["running_mean"] * scale
        w1f = lp["w1"] * scale[None, :]
        b1f = lp["b1"] * scale + shift
        w1s.append(_pad2(w1f, h_p, h_p).astype(jnp.bfloat16))
        b1s.append(_pad2(b1f.reshape(1, -1), 1, h_p))
        w2s.append(_pad2(lp["w2"], h_p, h_p).astype(jnp.bfloat16))
        b2s.append(_pad2(lp["b2"].reshape(1, -1), 1, h_p))
    w1 = jnp.stack(w1s)          # [L, Hp, Hp] bf16
    b1 = jnp.stack(b1s)          # [L, 1, Hp]  f32
    w2 = jnp.stack(w2s)
    b2 = jnp.stack(b2s)

    out_w = _pad2(params["out_w"], h_p, o_p).astype(jnp.bfloat16)
    out_b = _pad2(params["out_b"].reshape(1, -1), 1, o_p)

    inputs = (adj, x_pad, enc_w, enc_b, w1, b1, w2, b2, out_w, out_b)

    flops = (2 * n_p * x_p * h_p
             + n_layers * (2 * n_p * n_p * h_p + 4 * n_p * h_p * h_p)
             + 2 * n_p * h_p * o_p)
    bytes_accessed = (sum(int(a.size) * a.dtype.itemsize for a in inputs)
                      + 4 * (n_p * o_p + n_p * h_p))

    vmem_spec = pl.BlockSpec(memory_space=pltpu.MemorySpace.VMEM)
    logits_p, emb_p = pl.pallas_call(
        functools.partial(fused_gin_kernel, n_layers=n_layers),
        out_shape=(jax.ShapeDtypeStruct((n_p, o_p), jnp.float32),
                   jax.ShapeDtypeStruct((n_p, h_p), jnp.float32)),
        in_specs=[vmem_spec] * len(inputs),
        out_specs=(vmem_spec, vmem_spec),
        compiler_params=pltpu.CompilerParams(
            vmem_limit_bytes=32 * 1024 * 1024),
        cost_estimate=pl.CostEstimate(flops=flops, transcendentals=0,
                                      bytes_accessed=bytes_accessed),
    )(*inputs)

    # strip padding (padded node rows / feature cols never leak into real rows)
    logits = logits_p[:n, :n_out]
    emb = emb_p[:n, :hidden]
    return logits, emb
    # TODO(synk): GINEConv / edge_attr / edge_atten path not exercised (edge_attr_dim=0 config).


# --------------------------- pure-JAX reference ------------------------------

def gin_node_reference(params, x, edge_index, n_layers, eps=0.0, bn_eps=1e-5):
    n = x.shape[0]
    src, dst = edge_index[0], edge_index[1]
    adj = jnp.zeros((n, n), jnp.float32).at[dst, src].add(1.0)
    x = x @ params["enc_w"] + params["enc_b"]
    for lp in params["layers"][:n_layers]:
        agg = adj @ x + (1.0 + eps) * x
        h = agg @ lp["w1"] + lp["b1"]
        scale = lp["gamma"] / jnp.sqrt(lp["running_var"] + bn_eps)
        shift = lp["beta"] - lp["running_mean"] * scale
        h = h * scale + shift
        h = jnp.maximum(h, 0.0)
        h = h @ lp["w2"] + lp["b2"]
        x = jnp.maximum(h, 0.0)
    emb = x
    logits = emb @ params["out_w"] + params["out_b"]
    return logits, emb


# ----------------------------------- main ------------------------------------

if __name__ == "__main__":
    key = jax.random.PRNGKey(0)
    k_x, k_e, k_p = jax.random.split(key, 3)

    # small config consistent with the module
    N_NODES, X_DIM, HIDDEN, N_LAYERS = 16, 8, 32, 2
    NUM_CLASS, MULTI_LABEL = 3, False
    N_OUT = NUM_CLASS                 # num_class != 2 -> n_out = num_class
    N_EDGES = 48

    x = jax.random.normal(k_x, (N_NODES, X_DIM), jnp.float32)
    edge_index = jax.random.randint(k_e, (2, N_EDGES), 0, N_NODES, jnp.int32)
    batch = jnp.zeros((N_NODES,), jnp.int32)     # unused by IdenticalPool

    params = init_params(k_p, X_DIM, HIDDEN, N_LAYERS, N_OUT)

    logits, emb = gin_node_forward(params, x, edge_index, batch, N_LAYERS)
    jax.block_until_ready((logits, emb))

    assert logits.shape == (N_NODES, N_OUT)
    assert emb.shape == (N_NODES, HIDDEN)

    # correctness check vs pure-JAX f32 reference (loose tol: bf16 MXU inputs)
    ref_logits, ref_emb = gin_node_reference(params, x, edge_index, N_LAYERS)
    assert jnp.allclose(logits, ref_logits, atol=5e-2, rtol=5e-2)
    assert jnp.allclose(emb, ref_emb, atol=5e-2, rtol=5e-2)

    print("KERNEL_OK")
</pallas_src>

<mosaic_0001>
module attributes {stable_mosaic.version = 11 : i64} {
  func.func private @main(%arg0: i32) attributes {dimension_semantics = [#tpu.dimension_semantics<core_parallel>], iteration_bounds = array<i64: 2>, tpu.core_type = #tpu.core_type<sc_scalar_subcore>, window_params = []} {
    return
  }
}

module attributes {stable_mosaic.version = 11 : i64} {
  func.func private @main(%arg0: i32) attributes {dimension_semantics = [#tpu.dimension_semantics<core_parallel>], iteration_bounds = array<i64: 2>, tpu.core_type = #tpu.core_type<sc_scalar_subcore>, window_params = []} {
    return
  }
}

module attributes {stable_mosaic.version = 11 : i64} {
  func.func @fused_gin_kernel(%arg0: memref<16x16xbf16, #tpu.memory_space<vmem>>, %arg1: memref<16x128xbf16, #tpu.memory_space<vmem>>, %arg2: memref<128x128xbf16, #tpu.memory_space<vmem>>, %arg3: memref<1x128xf32, #tpu.memory_space<vmem>>, %arg4: memref<2x128x128xbf16, #tpu.memory_space<vmem>>, %arg5: memref<2x1x128xf32, #tpu.memory_space<vmem>>, %arg6: memref<2x128x128xbf16, #tpu.memory_space<vmem>>, %arg7: memref<2x1x128xf32, #tpu.memory_space<vmem>>, %arg8: memref<128x128xbf16, #tpu.memory_space<vmem>>, %arg9: memref<1x128xf32, #tpu.memory_space<vmem>>, %arg10: memref<16x128xf32, #tpu.memory_space<vmem>>, %arg11: memref<16x128xf32, #tpu.memory_space<vmem>>) attributes {dimension_semantics = [], scalar_prefetch = 0 : i64, scratch_operands = 0 : i64, tpu.core_type = #tpu.core_type<tc>} {
    %c0 = arith.constant 0 : index
    %c0_0 = arith.constant 0 : index
    %0 = vector.load %arg0[%c0, %c0_0] : memref<16x16xbf16, #tpu.memory_space<vmem>>, vector<16x16xbf16>
    %c0_1 = arith.constant 0 : index
    %c0_2 = arith.constant 0 : index
    %1 = vector.load %arg1[%c0_1, %c0_2] : memref<16x128xbf16, #tpu.memory_space<vmem>>, vector<16x128xbf16>
    %c0_3 = arith.constant 0 : index
    %c0_4 = arith.constant 0 : index
    %2 = vector.load %arg2[%c0_3, %c0_4] : memref<128x128xbf16, #tpu.memory_space<vmem>>, vector<128x128xbf16>
    %cst = arith.constant dense<0.000000e+00> : vector<16x128xf32>
    %3 = tpu.matmul %1, %2, %cst {dimension_numbers = #tpu.dot_dimension_numbers<[1], [0], [0], [1], [0, 0, 1, 1], [], []>} : vector<16x128xbf16>, vector<128x128xbf16>, vector<16x128xf32> -> vector<16x128xf32>
    %c0_5 = arith.constant 0 : index
    %c0_6 = arith.constant 0 : index
    %4 = vector.load %arg3[%c0_5, %c0_6] : memref<1x128xf32, #tpu.memory_space<vmem>>, vector<1x128xf32>
    %5 = vector.broadcast %4 : vector<1x128xf32> to vector<16x128xf32>
    %6 = arith.addf %3, %5 : vector<16x128xf32>
    %7 = arith.truncf %6 : vector<16x128xf32> to vector<16x128xbf16>
    %cst_7 = arith.constant dense<0.000000e+00> : vector<16x128xf32>
    %8 = tpu.matmul %0, %7, %cst_7 {dimension_numbers = #tpu.dot_dimension_numbers<[1], [0], [0], [1], [0, 0, 1, 1], [], []>} : vector<16x16xbf16>, vector<16x128xbf16>, vector<16x128xf32> -> vector<16x128xf32>
    %9 = arith.truncf %8 : vector<16x128xf32> to vector<16x128xbf16>
    %c0_8 = arith.constant 0 : index
    %c0_9 = arith.constant 0 : index
    %c0_10 = arith.constant 0 : index
    %10 = vector.load %arg4[%c0_8, %c0_9, %c0_10] : memref<2x128x128xbf16, #tpu.memory_space<vmem>>, vector<1x128x128xbf16>
    %11 = vector.shape_cast %10 : vector<1x128x128xbf16> to vector<128x128xbf16>
    %cst_11 = arith.constant dense<0.000000e+00> : vector<16x128xf32>
    %12 = tpu.matmul %9, %11, %cst_11 {dimension_numbers = #tpu.dot_dimension_numbers<[1], [0], [0], [1], [0, 0, 1, 1], [], []>} : vector<16x128xbf16>, vector<128x128xbf16>, vector<16x128xf32> -> vector<16x128xf32>
    %c0_12 = arith.constant 0 : index
    %c0_13 = arith.constant 0 : index
    %c0_14 = arith.constant 0 : index
    %13 = vector.load %arg5[%c0_12, %c0_13, %c0_14] : memref<2x1x128xf32, #tpu.memory_space<vmem>>, vector<1x1x128xf32>
    %14 = vector.shape_cast %13 : vector<1x1x128xf32> to vector<1x128xf32>
    %15 = vector.broadcast %14 : vector<1x128xf32> to vector<16x128xf32>
    %16 = arith.addf %12, %15 : vector<16x128xf32>
    %cst_15 = arith.constant 0.000000e+00 : f32
    %17 = vector.broadcast %cst_15 : f32 to vector<16x128xf32>
    %18 = arith.maximumf %16, %17 : vector<16x128xf32>
    %19 = arith.truncf %18 : vector<16x128xf32> to vector<16x128xbf16>
    %c0_16 = arith.constant 0 : index
    %c0_17 = arith.constant 0 : index
    %c0_18 = arith.constant 0 : index
    %20 = vector.load %arg6[%c0_16, %c0_17, %c0_18] : memref<2x128x128xbf16, #tpu.memory_space<vmem>>, vector<1x128x128xbf16>
    %21 = vector.shape_cast %20 : vector<1x128x128xbf16> to vector<128x128xbf16>
    %cst_19 = arith.constant dense<0.000000e+00> : vector<16x128xf32>
    %22 = tpu.matmul %19, %21, %cst_19 {dimension_numbers = #tpu.dot_dimension_numbers<[1], [0], [0], [1], [0, 0, 1, 1], [], []>} : vector<16x128xbf16>, vector<128x128xbf16>, vector<16x128xf32> -> vector<16x128xf32>
    %c0_20 = arith.constant 0 : index
    %c0_21 = arith.constant 0 : index
    %c0_22 = arith.constant 0 : index
    %23 = vector.load %arg7[%c0_20, %c0_21, %c0_22] : memref<2x1x128xf32, #tpu.memory_space<vmem>>, vector<1x1x128xf32>
    %24 = vector.shape_cast %23 : vector<1x1x128xf32> to vector<1x128xf32>
    %25 = vector.broadcast %24 : vector<1x128xf32> to vector<16x128xf32>
    %26 = arith.addf %22, %25 : vector<16x128xf32>
    %cst_23 = arith.constant 0.000000e+00 : f32
    %27 = vector.broadcast %cst_23 : f32 to vector<16x128xf32>
    %28 = arith.maximumf %26, %27 : vector<16x128xf32>
    %29 = arith.truncf %28 : vector<16x128xf32> to vector<16x128xbf16>
    %cst_24 = arith.constant dense<0.000000e+00> : vector<16x128xf32>
    %30 = tpu.matmul %0, %29, %cst_24 {dimension_numbers = #tpu.dot_dimension_numbers<[1], [0], [0], [1], [0, 0, 1, 1], [], []>} : vector<16x16xbf16>, vector<16x128xbf16>, vector<16x128xf32> -> vector<16x128xf32>
    %31 = arith.truncf %30 : vector<16x128xf32> to vector<16x128xbf16>
    %c1 = arith.constant 1 : index
    %c0_25 = arith.constant 0 : index
    %c0_26 = arith.constant 0 : index
    %32 = vector.load %arg4[%c1, %c0_25, %c0_26] : memref<2x128x128xbf16, #tpu.memory_space<vmem>>, vector<1x128x128xbf16>
    %33 = vector.shape_cast %32 : vector<1x128x128xbf16> to vector<128x128xbf16>
    %cst_27 = arith.constant dense<0.000000e+00> : vector<16x128xf32>
    %34 = tpu.matmul %31, %33, %cst_27 {dimension_numbers = #tpu.dot_dimension_numbers<[1], [0], [0], [1], [0, 0, 1, 1], [], []>} : vector<16x128xbf16>, vector<128x128xbf16>, vector<16x128xf32> -> vector<16x128xf32>
    %c1_28 = arith.constant 1 : index
    %c0_29 = arith.constant 0 : index
    %c0_30 = arith.constant 0 : index
    %35 = vector.load %arg5[%c1_28, %c0_29, %c0_30] : memref<2x1x128xf32, #tpu.memory_space<vmem>>, vector<1x1x128xf32>
    %36 = vector.shape_cast %35 : vector<1x1x128xf32> to vector<1x128xf32>
    %37 = vector.broadcast %36 : vector<1x128xf32> to vector<16x128xf32>
    %38 = arith.addf %34, %37 : vector<16x128xf32>
    %cst_31 = arith.constant 0.000000e+00 : f32
    %39 = vector.broadcast %cst_31 : f32 to vector<16x128xf32>
    %40 = arith.maximumf %38, %39 : vector<16x128xf32>
    %41 = arith.truncf %40 : vector<16x128xf32> to vector<16x128xbf16>
    %c1_32 = arith.constant 1 : index
    %c0_33 = arith.constant 0 : index
    %c0_34 = arith.constant 0 : index
    %42 = vector.load %arg6[%c1_32, %c0_33, %c0_34] : memref<2x128x128xbf16, #tpu.memory_space<vmem>>, vector<1x128x128xbf16>
    %43 = vector.shape_cast %42 : vector<1x128x128xbf16> to vector<128x128xbf16>
    %cst_35 = arith.constant dense<0.000000e+00> : vector<16x128xf32>
    %44 = tpu.matmul %41, %43, %cst_35 {dimension_numbers = #tpu.dot_dimension_numbers<[1], [0], [0], [1], [0, 0, 1, 1], [], []>} : vector<16x128xbf16>, vector<128x128xbf16>, vector<16x128xf32> -> vector<16x128xf32>
    %c1_36 = arith.constant 1 : index
    %c0_37 = arith.constant 0 : index
    %c0_38 = arith.constant 0 : index
    %45 = vector.load %arg7[%c1_36, %c0_37, %c0_38] : memref<2x1x128xf32, #tpu.memory_space<vmem>>, vector<1x1x128xf32>
    %46 = vector.shape_cast %45 : vector<1x1x128xf32> to vector<1x128xf32>
    %47 = vector.broadcast %46 : vector<1x128xf32> to vector<16x128xf32>
    %48 = arith.addf %44, %47 : vector<16x128xf32>
    %cst_39 = arith.constant 0.000000e+00 : f32
    %49 = vector.broadcast %cst_39 : f32 to vector<16x128xf32>
    %50 = arith.maximumf %48, %49 : vector<16x128xf32>
    %c0_40 = arith.constant 0 : index
    %c0_41 = arith.constant 0 : index
    %51 = vector.load %arg11[%c0_40, %c0_41] : memref<16x128xf32, #tpu.memory_space<vmem>>, vector<16x128xf32>
    tpu.vector_store %arg11[%c0_40, %c0_41], %50 {strides = array<i32>} : memref<16x128xf32, #tpu.memory_space<vmem>>, vector<16x128xf32>,
    %52 = arith.truncf %50 : vector<16x128xf32> to vector<16x128xbf16>
    %c0_42 = arith.constant 0 : index
    %c0_43 = arith.constant 0 : index
    %53 = vector.load %arg8[%c0_42, %c0_43] : memref<128x128xbf16, #tpu.memory_space<vmem>>, vector<128x128xbf16>
    %cst_44 = arith.constant dense<0.000000e+00> : vector<16x128xf32>
    %54 = tpu.matmul %52, %53, %cst_44 {dimension_numbers = #tpu.dot_dimension_numbers<[1], [0], [0], [1], [0, 0, 1, 1], [], []>} : vector<16x128xbf16>, vector<128x128xbf16>, vector<16x128xf32> -> vector<16x128xf32>
    %c0_45 = arith.constant 0 : index
    %c0_46 = arith.constant 0 : index
    %55 = vector.load %arg9[%c0_45, %c0_46] : memref<1x128xf32, #tpu.memory_space<vmem>>, vector<1x128xf32>
    %56 = vector.broadcast %55 : vector<1x128xf32> to vector<16x128xf32>
    %57 = arith.addf %54, %56 : vector<16x128xf32>
    %c0_47 = arith.constant 0 : index
    %c0_48 = arith.constant 0 : index
    %58 = vector.load %arg10[%c0_47, %c0_48] : memref<16x128xf32, #tpu.memory_space<vmem>>, vector<16x128xf32>
    tpu.vector_store %arg10[%c0_47, %c0_48], %57 {strides = array<i32>} : memref<16x128xf32, #tpu.memory_space<vmem>>, vector<16x128xf32>,
    return
  }
}

</mosaic_0001>

<bundles_post_ra>
// kernel: gin_node_forward.1
= control target key start
LH: loop header
LB: loop body
LE: loop exit
PB: predicated region body
PF: predicated region fallthrough
CT: control target
= control target key end

     0   :  { %v1216_v1 = vmov 0.0   ;;  %vm1217_vm0 = vmmov 0   ;;  %s1539_s0 = inlined_call_operand.vmem [shape: bf16[16,16], index: 0, kind: input, shape index: {}]   ;;  %s1540_s1 = inlined_call_operand.vmem [shape: bf16[16,128], index: 1, kind: input, shape index: {}]   ;;  %s1541_s2 = inlined_call_operand.vmem [shape: bf16[128,128], index: 2, kind: input, shape index: {}]   ;;  %s1542_s3 = inlined_call_operand.vmem [shape: f32[1,128], index: 3, kind: input, shape index: {}]   ;;  %s1543_s4 = inlined_call_operand.vmem [shape: bf16[2,128,128], index: 4, kind: input, shape index: {}]   ;;  %s1544_s5 = inlined_call_operand.vmem [shape: f32[2,1,128], index: 5, kind: input, shape index: {}]   ;;  %s1545_s6 = inlined_call_operand.vmem [shape: bf16[2,128,128], index: 6, kind: input, shape index: {}]   ;;  %s1546_s7 = inlined_call_operand.vmem [shape: f32[2,1,128], index: 7, kind: input, shape index: {}]   ;;  %s1547_s8 = inlined_call_operand.vmem [shape: bf16[128,128], index: 8, kind: input, shape index: {}]   ;;  %s1548_s9 = inlined_call_operand.vmem [shape: f32[1,128], index: 9, kind: input, shape index: {}]   ;;  %s1549_s10 = inlined_call_operand.vmem [shape: f32[16,128], index: 10, kind: output, shape index: {0}]   ;;  %s1550_s11 = inlined_call_operand.hbm [shape: f32[16,128], index: 11, kind: output, shape index: {1}]  }
   0x1   :  { %v1142_v0 = vld [vmem:[%s1541_s2] sm:$0xff]   ;;  %1005 = vmatprep.subr.bf16.mxu0 %v1216_v1  ;;  %1031 = vmatprep.subr.bf16.mxu1 %v1216_v1  ;;  %v1143_v2 = vld [vmem:[%s1541_s2 + $0x8] sm:$0xff]   ;;  %v1144_v3 = vld [vmem:[%s1541_s2 + $0x10] sm:$0xff]  }
   0x2   :  { %1006 = vmatpush3.bf16.msra.mxu0 %v1142_v0  ;;  %1021 = vmatprep.mubr.msk.bf16.mxu0 %vm1217_vm0, %v1216_v1  ;;  %v1145_v4 = vld [vmem:[%s1541_s2 + $0x18] sm:$0xff]   ;;  %v1146_v5 = vld [vmem:[%s1541_s2 + $0x20] sm:$0xff]   ;;  %v1147_v6 = vld [vmem:[%s1541_s2 + $0x28] sm:$0xff]  }
   0x3   :  { %1007 = vmatprep.subr.bf16.mxu0 %v1216_v1  ;;  %1047 = vmatprep.mubr.msk.bf16.mxu1 %vm1217_vm0, %v1216_v1  ;;  %v1148_v7 = vld [vmem:[%s1541_s2 + $0x30] sm:$0xff]   ;;  %v1149_v8 = vld [vmem:[%s1541_s2 + $0x38] sm:$0xff]   ;;  %v1150_v9 = vld [vmem:[%s1540_s1] sm:$0xff]  }
   0x6   :  { %1008 = vmatpush3.bf16.msra.mxu0 %v1143_v2 }
   0x7   :  { %1009 = vmatprep.subr.bf16.mxu0 %v1216_v1 }
   0xa   :  { %1010 = vmatpush3.bf16.msra.mxu0 %v1144_v3 }
   0xb   :  { %1011 = vmatprep.subr.bf16.mxu0 %v1216_v1 }
   0xe   :  { %1012 = vmatpush3.bf16.msra.mxu0 %v1145_v4 }
   0xf   :  { %1013 = vmatprep.subr.bf16.mxu0 %v1216_v1 }
  0x12   :  { %1014 = vmatpush3.bf16.msra.mxu0 %v1146_v5 }
  0x13   :  { %1015 = vmatprep.subr.bf16.mxu0 %v1216_v1 }
  0x16   :  { %1016 = vmatpush3.bf16.msra.mxu0 %v1147_v6 }
  0x17   :  { %1017 = vmatprep.subr.bf16.mxu0 %v1216_v1 }
  0x1a   :  { %1018 = vmatpush3.bf16.msra.mxu0 %v1148_v7 }
  0x1b   :  { %1019 = vmatprep.subr.bf16.mxu0 %v1216_v1 }
  0x1e   :  { %1020 = vmatpush3.bf16.msra.mxu0 %v1149_v8 }
  0x1f   :  { %1025 = vmatprep.subr.bf16.mxu0 %v1216_v1 }
  0x21   :  { %1022 = vmatmul.mubr.bf16.vlgmr.msra.gmra.mrb[0].mxu0 %v1150_v9 }
  0x22   :  { %1027 = vmatprep.mubr.msk.bf16.mxu0 %vm1217_vm0, %v1216_v1 }
  0x23   :  { %17 = vsyncpa [#allocation3], 0  ;;  %v1152_v10 = vld [vmem:[%s1543_s4] sm:$0xff]   ;;  %v1153_v11 = vld [vmem:[%s1543_s4 + $0x8] sm:$0xff]   ;;  %vm167_vm1 = vcmask 130048   ;;  %s1218_s13 = smov [#allocation2]  }
  0x24   :  { %1032 = vmatpush3.bf16.msra.mxu1 %v1152_v10  ;;  %v1154_v12 = vld [vmem:[%s1543_s4 + $0x10] sm:$0xff]   ;;  %v1155_v13 = vld [vmem:[%s1543_s4 + $0x18] sm:$0xff]   ;;  %v1156_v14 = vld [vmem:[%s1543_s4 + $0x20] sm:$0xff]   ;;  %s842_s14 = sshll.u32 %s1218_s13, 4  ;;  %s843_s14 = int_to_ptr.vmem [resolvable:$true] %s842_s14 }
  0x25   :  { %1033 = vmatprep.subr.bf16.mxu1 %v1216_v1  ;;  %v1157_v15 = vld [vmem:[%s1543_s4 + $0x28] sm:$0xff]   ;;  %v1158_v16 = vld [vmem:[%s1543_s4 + $0x30] sm:$0xff]   ;;  %v855_v17 = vld [vmem:[%s1542_s3] ss:$0 sm:$0xff]  ;;  %p1197_p1 = scmp.lt.s32.totalorder %s843_s14, %s843_s14 }
  0x26   :  { %v1358_v25 = vld [vmem:[%s1539_s0] sm:$0xff]   ;;  %v1159_v26 = vld [vmem:[%s1543_s4 + $0x38] sm:$0xff]   ;;  %v1161_v28 = vld [vmem:[%s1545_s6 + $0x8] sm:$0xff]  }
  0x27   :  { %v1160_v27 = vld [vmem:[%s1545_s6] sm:$0xff]   ;;  %v1162_v29 = vld [vmem:[%s1545_s6 + $0x10] sm:$0xff]   ;;  %v1163_v30 = vld [vmem:[%s1545_s6 + $0x18] sm:$0xff]  }
  0x28   :  { %1034 = vmatpush3.bf16.msra.mxu1 %v1153_v11  ;;  %v1164_v31 = vld [vmem:[%s1545_s6 + $0x20] sm:$0xff]   ;;  %v1165_v32 = vld [vmem:[%s1545_s6 + $0x28] sm:$0xff]   ;;  %v1166_v38 = vld [vmem:[%s1545_s6 + $0x30] sm:$0xff]  }
  0x29   :  { %1035 = vmatprep.subr.bf16.mxu1 %v1216_v1  ;;  %v1167_v39 = vld [vmem:[%s1545_s6 + $0x38] sm:$0xff]   ;;  %v867_v40 = vld [vmem:[%s1544_s5] ss:$0 sm:$0xff]  ;;  %v1169_v61 = vld [vmem:[%s1543_s4 + $0x48] sm:$0xff]  }
  0x2a   :  { %v876_v50 = vld [vmem:[%s1546_s7] ss:$0 sm:$0xff]  ;;  %v1170_v62 = vld [vmem:[%s1543_s4 + $0x50] sm:$0xff]   ;;  %v1171_v63 = vld [vmem:[%s1543_s4 + $0x58] sm:$0xff]  }
  0x2b   :  { %v1168_v60 = vld [vmem:[%s1543_s4 + $0x40] sm:$0xff]   ;;  %v1173_v2 = vld [vmem:[%s1543_s4 + $0x68] sm:$0xff]   ;;  %v1174_v3 = vld [vmem:[%s1543_s4 + $0x70] sm:$0xff]  }
  0x2c   :  { %1036 = vmatpush3.bf16.msra.mxu1 %v1154_v12  ;;  %v1172_v0 = vld [vmem:[%s1543_s4 + $0x60] sm:$0xff]   ;;  %v1175_v4 = vld [vmem:[%s1543_s4 + $0x78] sm:$0xff]   ;;  %v1177_v6 = vld [vmem:[%s1545_s6 + $0x48] sm:$0xff]  }
  0x2d   :  { %1037 = vmatprep.subr.bf16.mxu1 %v1216_v1  ;;  %v1176_v5 = vld [vmem:[%s1545_s6 + $0x40] sm:$0xff]   ;;  %v1178_v7 = vld [vmem:[%s1545_s6 + $0x50] sm:$0xff]   ;;  %v1179_v8 = vld [vmem:[%s1545_s6 + $0x58] sm:$0xff]  }
  0x2e   :  { %v1180_v9 = vld [vmem:[%s1545_s6 + $0x60] sm:$0xff]   ;;  %v1181_v10 = vld [vmem:[%s1545_s6 + $0x68] sm:$0xff]  }
  0x30   :  { %1038 = vmatpush3.bf16.msra.mxu1 %v1155_v13 }
  0x31   :  { %1039 = vmatprep.subr.bf16.mxu1 %v1216_v1 }
  0x34   :  { %1040 = vmatpush3.bf16.msra.mxu1 %v1156_v14 }
  0x35   :  { %1041 = vmatprep.subr.bf16.mxu1 %v1216_v1 }
  0x38   :  { %1042 = vmatpush3.bf16.msra.mxu1 %v1157_v15 }
  0x39   :  { %1043 = vmatprep.subr.bf16.mxu1 %v1216_v1 }
  0x3c   :  { %1044 = vmatpush3.bf16.msra.mxu1 %v1158_v16  ;;  %v1182_v16 = vld [vmem:[%s1545_s6 + $0x70] sm:$0xff]  }
  0x3d   :  { %1045 = vmatprep.subr.bf16.mxu1 %v1216_v1 }
  0x40   :  { %1046 = vmatpush3.bf16.msra.mxu1 %v1159_v26 }
  0x41   :  { %1071 = vmatprep.subr.bf16.mxu1 %v1216_v1 }
  0xf4   :  { %v154_v18 = vpop.f32.mrb[0].mxu0 }
  0xf5   :  { %v1023_v19 = vpop.f32.mrb[1].mxu0  ;;  %v155_v21 = vadd.f32 %v855_v17, %v154_v18  ;;  %v1184_v18 = vld [vmem:[%s1547_s8] sm:$0xff]  }
  0xf6   :  { %v157_v20 = vpop.f32.mrb[2].mxu0  ;;  %v1185_v19 = vld [vmem:[%s1547_s8 + $0x8] sm:$0xff]  }
  0xf7   :  { %v158_v22 = vadd.f32 %v855_v17, %v157_v20  ;;  %v1024_v23 = vpop.f32.mrb[3].mxu0  ;;  %v1183_v17 = vld [vmem:[%s1545_s6 + $0x78] sm:$0xff]   ;;  %v1186_v20 = vld [vmem:[%s1547_s8 + $0x10] sm:$0xff]  }
  0xf8   :  { %v1189_v23 = vld [vmem:[%s1547_s8 + $0x28] sm:$0xff]  }
  0xf9   :  { %v161_v24 = vpack.c.bf16 %v158_v22, %v155_v21  ;;  %v1187_v21 = vld [vmem:[%s1547_s8 + $0x18] sm:$0xff]   ;;  %v1188_v22 = vld [vmem:[%s1547_s8 + $0x20] sm:$0xff]  }
  0xfb   :  { %1026 = vmatpush3.bf16.msra.mxu0 %v161_v24  ;;  %v903_v24 = vld [vmem:[%s1544_s5 + $0x1] ss:$0 sm:$0xff] }
  0xfc   :  { %1051 = vmatprep.subr.bf16.mxu0 %v1216_v1 }
  0xfe   :  { %1028 = vmatmul.mubr.msk.bf16.vlgmr.msra.gmra.mrb[4].mxu0 %vm167_vm1, %v1358_v25 }
  0xff   :  { %1067 = vmatprep.mubr.msk.bf16.mxu0 %vm1217_vm0, %v1216_v1  ;;  %1052 = vmatpush3.bf16.msra.mxu0 %v1160_v27 }
 0x100   :  { %1053 = vmatprep.subr.bf16.mxu0 %v1216_v1 }
 0x103   :  { %1054 = vmatpush3.bf16.msra.mxu0 %v1161_v28 }
 0x104   :  { %1055 = vmatprep.subr.bf16.mxu0 %v1216_v1 }
 0x107   :  { %1056 = vmatpush3.bf16.msra.mxu0 %v1162_v29 }
 0x108   :  { %1057 = vmatprep.subr.bf16.mxu0 %v1216_v1 }
 0x10b   :  { %1058 = vmatpush3.bf16.msra.mxu0 %v1163_v30 }
 0x10c   :  { %1059 = vmatprep.subr.bf16.mxu0 %v1216_v1 }
 0x10f   :  { %1060 = vmatpush3.bf16.msra.mxu0 %v1164_v31 }
 0x110   :  { %1061 = vmatprep.subr.bf16.mxu0 %v1216_v1 }
 0x113   :  { %1062 = vmatpush3.bf16.msra.mxu0 %v1165_v32 }
 0x114   :  { %1063 = vmatprep.subr.bf16.mxu0 %v1216_v1 }
 0x117   :  { %1064 = vmatpush3.bf16.msra.mxu0 %v1166_v38 }
 0x118   :  { %1065 = vmatprep.subr.bf16.mxu0 %v1216_v1 }
 0x11b   :  { %1066 = vmatpush3.bf16.msra.mxu0 %v1167_v39 }
 0x11c   :  { %1097 = vmatprep.subr.bf16.mxu0 %v1216_v1 }
 0x1d1   :  { %v205_v33 = vpop.f32.mrb[4].mxu0 }
 0x1d2   :  { %v1029_v34 = vpop.f32.mrb[5].mxu0 }
 0x1d3   :  { %v208_v35 = vpop.f32.mrb[6].mxu0  ;;  %v1190_v34 = vld [vmem:[%s1547_s8 + $0x30] sm:$0xff]  }
 0x1d4   :  { %v212_v36 = vpack.c.bf16 %v208_v35, %v205_v33  ;;  %v1030_v37 = vpop.f32.mrb[7].mxu0  ;;  %v1191_v35 = vld [vmem:[%s1547_s8 + $0x38] sm:$0xff]   ;;  %s1192_s8 = scalar_lea.vmem %s843_s14, 256 }
 0x1d5   :  { %p1193_p0 = scmp.ne.s32.totalorder %s843_s14, %s1192_s8  ;;  %p1198_p2 = scmp.lt.s32.totalorder %s1192_s8, %s1192_s8 }
 0x1d6   :  { %1048 = vmatmul.mubr.bf16.vlgmr.msra.gmra.mrb[0].mxu1 %v212_v36  ;;  %v929_v36 = vld [vmem:[%s1546_s7 + $0x1] ss:$0 sm:$0xff] }
 0x1d7   :  { %1073 = vmatprep.mubr.msk.bf16.mxu1 %vm1217_vm0, %v1216_v1  ;;  %p1199_p3 = por %p1198_p2, %p1197_p1 }
 0x1d9   :  { %p1200_p4 = pnand %p1199_p3, %p1193_p0 }
 0x2a9   :  { %v318_v41 = vpop.f32.mrb[0].mxu1 }
 0x2aa   :  { %v319_v42 = vadd.f32 %v867_v40, %v318_v41  ;;  %v1049_v43 = vpop.f32.mrb[1].mxu1 }
 0x2ab   :  { %v321_v44 = vpop.f32.mrb[2].mxu1 }
 0x2ac   :  { %v322_v45 = vadd.f32 %v867_v40, %v321_v44  ;;  %v1050_v46 = vpop.f32.mrb[3].mxu1  ;;  %v325_v47 = vmax.f32 %v319_v42, 0.0 }
 0x2ae   :  { %v326_v48 = vmax.f32 %v322_v45, 0.0 }
 0x2b0   :  { %v327_v49 = vpack.c.bf16 %v326_v48, %v325_v47 }
 0x2b2   :  { %1068 = vmatmul.mubr.bf16.vlgmr.msra.gmra.mrb[8].mxu0 %v327_v49 }
 0x2b3   :  { %1113 = vmatprep.mubr.msk.bf16.mxu0 %vm1217_vm0, %v1216_v1  ;;  %1098 = vmatpush3.bf16.msra.mxu0 %v1176_v5 }
 0x2b4   :  { %1099 = vmatprep.subr.bf16.mxu0 %v1216_v1 }
 0x2b7   :  { %1100 = vmatpush3.bf16.msra.mxu0 %v1177_v6 }
 0x2b8   :  { %1101 = vmatprep.subr.bf16.mxu0 %v1216_v1 }
 0x2bb   :  { %1102 = vmatpush3.bf16.msra.mxu0 %v1178_v7 }
 0x2bc   :  { %1103 = vmatprep.subr.bf16.mxu0 %v1216_v1 }
 0x2bf   :  { %1104 = vmatpush3.bf16.msra.mxu0 %v1179_v8 }
 0x2c0   :  { %1105 = vmatprep.subr.bf16.mxu0 %v1216_v1 }
 0x2c3   :  { %1106 = vmatpush3.bf16.msra.mxu0 %v1180_v9 }
 0x2c4   :  { %1107 = vmatprep.subr.bf16.mxu0 %v1216_v1 }
 0x2c7   :  { %1108 = vmatpush3.bf16.msra.mxu0 %v1181_v10 }
 0x2c8   :  { %1109 = vmatprep.subr.bf16.mxu0 %v1216_v1 }
 0x2cb   :  { %1110 = vmatpush3.bf16.msra.mxu0 %v1182_v16 }
 0x2cc   :  { %1111 = vmatprep.subr.bf16.mxu0 %v1216_v1 }
 0x2cf   :  { %1112 = vmatpush3.bf16.msra.mxu0 %v1183_v17 }
 0x385   :  { %v433_v51 = vpop.f32.mrb[8].mxu0 }
 0x386   :  { %v434_v52 = vadd.f32 %v876_v50, %v433_v51  ;;  %v1069_v53 = vpop.f32.mrb[9].mxu0 }
 0x387   :  { %v436_v54 = vpop.f32.mrb[10].mxu0 }
 0x388   :  { %v437_v55 = vadd.f32 %v876_v50, %v436_v54  ;;  %v1070_v56 = vpop.f32.mrb[11].mxu0  ;;  %v440_v57 = vmax.f32 %v434_v52, 0.0 }
 0x38a   :  { %v441_v58 = vmax.f32 %v437_v55, 0.0 }
 0x38c   :  { %v442_v59 = vpack.c.bf16 %v441_v58, %v440_v57 }
 0x38e   :  { %1072 = vmatpush3.bf16.msra.mxu1 %v442_v59 }
 0x38f   :  { %1077 = vmatprep.subr.bf16.mxu1 %v1216_v1 }
 0x391   :  { %1074 = vmatmul.mubr.msk.bf16.vlgmr.msra.gmra.mrb[4].mxu1 %vm167_vm1, %v1358_v25 }
 0x392   :  { %1078 = vmatpush3.bf16.msra.mxu1 %v1168_v60  ;;  %1093 = vmatprep.mubr.msk.bf16.mxu1 %vm1217_vm0, %v1216_v1 }
 0x393   :  { %1079 = vmatprep.subr.bf16.mxu1 %v1216_v1 }
 0x396   :  { %1080 = vmatpush3.bf16.msra.mxu1 %v1169_v61 }
 0x397   :  { %1081 = vmatprep.subr.bf16.mxu1 %v1216_v1 }
 0x39a   :  { %1082 = vmatpush3.bf16.msra.mxu1 %v1170_v62 }
 0x39b   :  { %1083 = vmatprep.subr.bf16.mxu1 %v1216_v1 }
 0x39e   :  { %1084 = vmatpush3.bf16.msra.mxu1 %v1171_v63 }
 0x39f   :  { %1085 = vmatprep.subr.bf16.mxu1 %v1216_v1 }
 0x3a2   :  { %1086 = vmatpush3.bf16.msra.mxu1 %v1172_v0 }
 0x3a3   :  { %1087 = vmatprep.subr.bf16.mxu1 %v1216_v1 }
 0x3a6   :  { %1088 = vmatpush3.bf16.msra.mxu1 %v1173_v2 }
 0x3a7   :  { %1089 = vmatprep.subr.bf16.mxu1 %v1216_v1 }
 0x3aa   :  { %1090 = vmatpush3.bf16.msra.mxu1 %v1174_v3 }
 0x3ab   :  { %1091 = vmatprep.subr.bf16.mxu1 %v1216_v1 }
 0x3ae   :  { %1092 = vmatpush3.bf16.msra.mxu1 %v1175_v4 }
 0x3af   :  { %1117 = vmatprep.subr.bf16.mxu1 %v1216_v1 }
 0x464   :  { %v477_v11 = vpop.f32.mrb[4].mxu1 }
 0x465   :  { %v1075_v12 = vpop.f32.mrb[5].mxu1 }
 0x466   :  { %v480_v13 = vpop.f32.mrb[6].mxu1 }
 0x467   :  { %v484_v14 = vpack.c.bf16 %v480_v13, %v477_v11  ;;  %v1076_v15 = vpop.f32.mrb[7].mxu1 }
 0x469   :  { %1094 = vmatmul.mubr.bf16.vlgmr.msra.gmra.mrb[8].mxu1 %v484_v14 }
 0x46a   :  { %1133 = vmatprep.mubr.msk.bf16.mxu1 %vm1217_vm0, %v1216_v1  ;;  %1118 = vmatpush3.bf16.msra.mxu1 %v1184_v18 }
 0x46b   :  { %1119 = vmatprep.subr.bf16.mxu1 %v1216_v1 }
 0x46e   :  { %1120 = vmatpush3.bf16.msra.mxu1 %v1185_v19 }
 0x46f   :  { %1121 = vmatprep.subr.bf16.mxu1 %v1216_v1 }
 0x472   :  { %1122 = vmatpush3.bf16.msra.mxu1 %v1186_v20 }
 0x473   :  { %1123 = vmatprep.subr.bf16.mxu1 %v1216_v1 }
 0x476   :  { %1124 = vmatpush3.bf16.msra.mxu1 %v1187_v21 }
 0x477   :  { %1125 = vmatprep.subr.bf16.mxu1 %v1216_v1 }
 0x47a   :  { %1126 = vmatpush3.bf16.msra.mxu1 %v1188_v22 }
 0x47b   :  { %1127 = vmatprep.subr.bf16.mxu1 %v1216_v1 }
 0x47e   :  { %1128 = vmatpush3.bf16.msra.mxu1 %v1189_v23 }
 0x47f   :  { %1129 = vmatprep.subr.bf16.mxu1 %v1216_v1 }
 0x482   :  { %1130 = vmatpush3.bf16.msra.mxu1 %v1190_v34 }
 0x483   :  { %1131 = vmatprep.subr.bf16.mxu1 %v1216_v1 }
 0x486   :  { %1132 = vmatpush3.bf16.msra.mxu1 %v1191_v35 }
 0x53c   :  { %v592_v25 = vpop.f32.mrb[8].mxu1 }
 0x53d   :  { %v593_v26 = vadd.f32 %v903_v24, %v592_v25  ;;  %v1095_v27 = vpop.f32.mrb[9].mxu1 }
 0x53e   :  { %v595_v28 = vpop.f32.mrb[10].mxu1 }
 0x53f   :  { %v596_v29 = vadd.f32 %v903_v24, %v595_v28  ;;  %v1096_v30 = vpop.f32.mrb[11].mxu1  ;;  %v599_v31 = vmax.f32 %v593_v26, 0.0 }
 0x541   :  { %v600_v32 = vmax.f32 %v596_v29, 0.0 }
 0x543   :  { %v601_v33 = vpack.c.bf16 %v600_v32, %v599_v31 }
 0x545   :  { %1114 = vmatmul.mubr.bf16.vlgmr.msra.gmra.mrb[12].mxu0 %v601_v33 }
 0x618   :  { %v709_v37 = vpop.f32.mrb[12].mxu0 }
 0x619   :  { %v710_v38 = vadd.f32 %v929_v36, %v709_v37  ;;  %v1115_v39 = vpop.f32.mrb[13].mxu0 }
 0x61a   :  { %v712_v40 = vpop.f32.mrb[14].mxu0 }
 0x61b   :  { %v716_v41 = vmax.f32 %v710_v38, 0.0  ;;  %v713_v42 = vadd.f32 %v929_v36, %v712_v40  ;;  %v1116_v43 = vpop.f32.mrb[15].mxu0 }
 0x61d   :  { %718 = vst [vmem:[#allocation2] sm:$0xff] %v716_v41  ;;  %v717_v44 = vmax.f32 %v713_v42, 0.0 }
 0x61f   :  { %719 = vst [vmem:[#allocation2 + $0x8] sm:$0xff] %v717_v44  ;;  %v720_v1 = vpack.c.bf16 %v717_v44, %v716_v41 }
 0x621   :  { %1134 = vmatmul.mubr.bf16.vlgmr.msra.gmra.mrb[12].mxu1 %v720_v1 }
 0x622   :  { %1203 = shalt.err (!%p1200_p4)
}
 0x623   :  { %s1204_s15 = scalar_lea.hbm %s1550_s11, 256 }
 0x624   :  { %p1205_p5 = scmp.ne.s32.totalorder %s1550_s11, %s1204_s15  ;;  %p1208_p6 = scmp.lt.u32.totalorder %s1204_s15, %s1550_s11 }
 0x626   :  { %p1210_p7 = pnand %p1208_p6, %p1205_p5 }
 0x628   :  { %1213 = shalt.err (!%p1210_p7)
}
 0x629   :  { %s1219_s1 = smov 128   ;;  %s1220_s19 = smov 8   ;;  %v938_v45 = vld [vmem:[%s1548_s9] ss:$0 sm:$0xff] }
 0x62a   :  { %848 = dma.vmem_to_hbm [thread:$0]  %s843_s14, 256, %s1550_s11, [#allocation3], %s1219_s1, %s1219_s1, %s1220_s19  }
 0x6f4   :  { %v826_v46 = vpop.f32.mrb[12].mxu1 }
 0x6f5   :  { %v827_v47 = vadd.f32 %v938_v45, %v826_v46  ;;  %v1135_v48 = vpop.f32.mrb[13].mxu1 }
 0x6f6   :  { %v829_v49 = vpop.f32.mrb[14].mxu1 }
 0x6f7   :  { %833 = vst [vmem:[%s1549_s10] sm:$0xff] %v827_v47  ;;  %v830_v50 = vadd.f32 %v938_v45, %v829_v49  ;;  %v1136_v51 = vpop.f32.mrb[15].mxu1 }
 0x6f9   :  { %834 = vst [vmem:[%s1549_s10 + $0x8] sm:$0xff] %v830_v50 }
 0x6fa   :  { %1214 = dma.done.wait [#allocation3], 256  }
 0x6fb   :  { %1215 = vsyncadd [#allocation3], 4294967040 }
 0x6fc   :  { %854 = vsyncpa [#allocation3], 1 }

</bundles_post_ra>
